<compile_context>
chip_gen: v7x
topology: tpu7x:2x2x1
jax: 0.10.0
libtpu: 0.0.40
codegen_flags: <defaults>
</compile_context>

<pallas_src>
import jax
import jax.numpy as jnp
from jax.experimental import pallas as pl
from jax.experimental.pallas import tpu as pltpu

_NEG_BIG = jnp.float32(-1e30)   # stands in for -inf on padded logit lanes
_LANE = 128
_SUBLANE = 8
_F32B = 4


def _round_up(x, m):
    return ((x + m - 1) // m) * m


def _vmem_limit(required_bytes):
    # Largest-block-that-fits rule: 2x headroom over resident weights +
    # double-buffered blocks, floored at the 32 MiB scoped default and capped
    # conservatively (v7x has only 64 MiB physical VMEM per TensorCore).
    return int(min(max(2 * required_bytes, 32 * 1024 * 1024),
                   48 * 1024 * 1024))


# ---------------- Pass 1 kernel: input projection (parallel) ----------------

def _input_proj_kernel(x_ref, w_ref, b_ref, pre_ref):
    pre_ref[...] = (
        jnp.dot(x_ref[...], w_ref[...], preferred_element_type=jnp.float32)
        + b_ref[...])


# ---------------- Pass 2 kernel: sequential recurrence ----------------------

def _recurrence_kernel(h0_ref, pre_ref, w_hh_ref, hseq_ref, hcarry_ref):
    # Initialize the VMEM-resident hidden carry from the initial hidden state.
    @pl.when(pl.program_id(0) == 0)
    def _():
        hcarry_ref[...] = h0_ref[...]

    w_hh = w_hh_ref[...]                     # resident (Hp, Hp) weights
    tt = pre_ref.shape[0]                    # static timesteps per block

    def step(k, h):
        h = jnp.tanh(pre_ref[k]
                     + jnp.dot(h, w_hh, preferred_element_type=jnp.float32))
        hseq_ref[k] = h
        return h

    hcarry_ref[...] = jax.lax.fori_loop(0, tt, step, hcarry_ref[...],
                                        unroll=True)


# ---------------- Pass 3 kernel: output projection + log_softmax ------------

def _output_proj_kernel(h_ref, w_ref, b_ref, out_ref):
    logits = (jnp.dot(h_ref[...], w_ref[...],
                      preferred_element_type=jnp.float32) + b_ref[...])
    m = jnp.max(logits, axis=-1, keepdims=True)
    shifted = logits - m
    lse = jnp.log(jnp.sum(jnp.exp(shifted), axis=-1, keepdims=True))
    out_ref[...] = (shifted - lse).astype(out_ref.dtype)


# ---------------- Parameter fusion / padding ---------------------------------

def fuse_params(params, num_languages):
    """Fuse and lane-pad raw (in, out)-layout parameters for the kernels.

    Returns (w_ih_p, b_pre_p, w_hh_p, w_ho_p, b_ho_p):
      w_ih_p  : (A, Hp)   zero-padded hidden columns
      b_pre_p : (1, Hp)   b_ih + b_hh folded, zero-padded
      w_hh_p  : (Hp, Hp)  zero-padded rows & columns (padded hidden lanes stay 0)
      w_ho_p  : (Hp, Lp)  zero-padded rows, zero-padded logit columns
      b_ho_p  : (1, Lp)   padded logit columns set to -1e30 (ignored by softmax)
    """
    w_ih, b_ih, w_hh, b_hh, w_ho, b_ho = params
    A, H = w_ih.shape
    L = num_languages
    Hp = _round_up(H, _LANE)
    Lp = _round_up(L, _LANE)
    w_ih_p = jnp.pad(w_ih, ((0, 0), (0, Hp - H)))
    b_pre_p = jnp.pad(b_ih + b_hh, ((0, 0), (0, Hp - H)))
    w_hh_p = jnp.pad(w_hh, ((0, Hp - H), (0, Hp - H)))
    w_ho_p = jnp.pad(w_ho, ((0, Hp - H), (0, Lp - L)))
    b_ho_p = jnp.pad(b_ho, ((0, 0), (0, Lp - L)), constant_values=_NEG_BIG)
    return w_ih_p, b_pre_p, w_hh_p, w_ho_p, b_ho_p


# ---------------- Whole-sequence forward --------------------------------------

def rnn_sequence_forward(x_seq, hidden0, fused_params, num_languages, *,
                         time_block=32):
    """Run the RNN over a whole sequence (three pallas_calls).

    x_seq:   (T, B, A) f32  (sequence-major, as the PyTorch training loop uses)
    hidden0: (B, H)    f32
    returns: (out_seq (T, B, L) per-step log-probs, hidden_T (B, H))
    """
    w_ih, b_pre, w_hh, w_ho, b_ho = fused_params
    T, B, A = x_seq.shape
    H = hidden0.shape[-1]
    Hp = w_hh.shape[0]
    Lp = w_ho.shape[1]
    L = num_languages

    Bp = max(_SUBLANE, _round_up(B, _SUBLANE))       # full f32 sublane tile
    TT = max(1, min(time_block, T))                  # timesteps per grid block
    Tp = _round_up(T, TT)
    nT = Tp // TT
    rows = TT * Bp                                    # rows per parallel block
    total_rows = Tp * Bp

    x_p = jnp.pad(x_seq.astype(jnp.float32),
                  ((0, Tp - T), (0, Bp - B), (0, 0)))
    h0_p = jnp.pad(hidden0.astype(jnp.float32),
                   ((0, Bp - B), (0, Hp - H)))

    # ---- Pass 1: pre = x @ W_ih + (b_ih + b_hh), fully parallel over time ----
    x2d = x_p.reshape(total_rows, A)
    pre2d = pl.pallas_call(
        _input_proj_kernel,
        out_shape=jax.ShapeDtypeStruct((total_rows, Hp), jnp.float32),
        grid=(nT,),
        in_specs=[
            pl.BlockSpec((rows, A), lambda t: (t, 0)),
            pl.BlockSpec((A, Hp), lambda t: (0, 0)),
            pl.BlockSpec((1, Hp), lambda t: (0, 0)),
        ],
        out_specs=pl.BlockSpec((rows, Hp), lambda t: (t, 0)),
        compiler_params=pltpu.CompilerParams(
            dimension_semantics=("parallel",),
            vmem_limit_bytes=_vmem_limit(
                2 * rows * (A + Hp) * _F32B + (A + 1) * Hp * _F32B)),
        cost_estimate=pl.CostEstimate(
            flops=2 * total_rows * A * Hp,
            transcendentals=0,
            bytes_accessed=(total_rows * (A + Hp) + (A + 1) * Hp) * _F32B),
    )(x2d, w_ih, b_pre)
    pre = pre2d.reshape(Tp, Bp, Hp)

    # ---- Pass 2: sequential recurrence, TT timesteps per grid iteration -----
    h_seq = pl.pallas_call(
        _recurrence_kernel,
        out_shape=jax.ShapeDtypeStruct((Tp, Bp, Hp), jnp.float32),
        grid=(nT,),
        in_specs=[
            pl.BlockSpec((Bp, Hp), lambda t: (0, 0)),          # h0 (loaded once)
            pl.BlockSpec((TT, Bp, Hp), lambda t: (t, 0, 0)),   # pre block
            pl.BlockSpec((Hp, Hp), lambda t: (0, 0)),          # resident W_hh
        ],
        out_specs=pl.BlockSpec((TT, Bp, Hp), lambda t: (t, 0, 0)),
        scratch_shapes=[pltpu.VMEM((Bp, Hp), jnp.float32)],    # hidden carry
        compiler_params=pltpu.CompilerParams(
            dimension_semantics=("arbitrary",),
            vmem_limit_bytes=_vmem_limit(
                4 * TT * Bp * Hp * _F32B + Hp * Hp * _F32B
                + 2 * Bp * Hp * _F32B)),
        cost_estimate=pl.CostEstimate(
            flops=2 * Tp * Bp * Hp * Hp,
            transcendentals=Tp * Bp * Hp,
            bytes_accessed=(2 * Tp * Bp * Hp + Hp * Hp + Bp * Hp) * _F32B),
    )(h0_p, pre, w_hh)

    # ---- Pass 3: logits + log_softmax, fully parallel over time -------------
    h2d = h_seq.reshape(total_rows, Hp)
    out2d = pl.pallas_call(
        _output_proj_kernel,
        out_shape=jax.ShapeDtypeStruct((total_rows, Lp), jnp.float32),
        grid=(nT,),
        in_specs=[
            pl.BlockSpec((rows, Hp), lambda t: (t, 0)),
            pl.BlockSpec((Hp, Lp), lambda t: (0, 0)),
            pl.BlockSpec((1, Lp), lambda t: (0, 0)),
        ],
        out_specs=pl.BlockSpec((rows, Lp), lambda t: (t, 0)),
        compiler_params=pltpu.CompilerParams(
            dimension_semantics=("parallel",),
            vmem_limit_bytes=_vmem_limit(
                2 * rows * (Hp + Lp) * _F32B + (Hp + 1) * Lp * _F32B)),
        cost_estimate=pl.CostEstimate(
            flops=2 * total_rows * Hp * Lp,
            transcendentals=2 * total_rows * Lp,
            bytes_accessed=(total_rows * (Hp + Lp) + (Hp + 1) * Lp) * _F32B),
    )(h2d, w_ho, b_ho)

    out_seq = out2d.reshape(Tp, Bp, Lp)[:T, :B, :L]
    hidden_T = h_seq[T - 1, :B, :H]       # hidden after the last REAL step
    return out_seq, hidden_T


def rnn_forward(x, hidden, fused_params, num_languages):
    """Single step, matching `RecurrentNeuralNetwork.forward(x, hidden)`."""
    out_seq, hid = rnn_sequence_forward(x[None], hidden, fused_params,
                                        num_languages)
    return out_seq[0], hid


# ---------------- Init + pure-JAX reference ----------------------------------

def init_params(key, alphabet_size, hidden_size, num_languages):
    """Deterministic init; weights stored as (in, out) = PyTorch weight.T."""
    ks = jax.random.split(key, 6)

    def unif(k, shape, fan_in):
        bound = 1.0 / jnp.sqrt(fan_in)
        return jax.random.uniform(k, shape, jnp.float32, -bound, bound)

    w_ih = unif(ks[0], (alphabet_size, hidden_size), alphabet_size)
    b_ih = unif(ks[1], (1, hidden_size), alphabet_size)
    w_hh = unif(ks[2], (hidden_size, hidden_size), hidden_size)
    b_hh = unif(ks[3], (1, hidden_size), hidden_size)
    w_ho = unif(ks[4], (hidden_size, num_languages), hidden_size)
    b_ho = unif(ks[5], (1, num_languages), hidden_size)
    return (w_ih, b_ih, w_hh, b_hh, w_ho, b_ho)


def rnn_reference(x_seq, hidden, params):
    """Pure-JAX reference of the PyTorch module applied over a sequence."""
    w_ih, b_ih, w_hh, b_hh, w_ho, b_ho = params
    hi = jax.lax.Precision.HIGHEST
    outs = []
    h = hidden
    for t in range(x_seq.shape[0]):
        h = jnp.tanh(jnp.dot(x_seq[t], w_ih, precision=hi) + b_ih
                     + jnp.dot(h, w_hh, precision=hi) + b_hh)
        outs.append(jax.nn.log_softmax(jnp.dot(h, w_ho, precision=hi) + b_ho,
                                       axis=-1))
    return jnp.stack(outs), h


if __name__ == "__main__":
    key = jax.random.PRNGKey(0)
    # batch, len(alphabets), hidden_size, len(languages), sequence length
    B, A, H, L, T = 2, 16, 32, 8, 6

    k_p, k_x = jax.random.split(key, 2)
    params = init_params(k_p, A, H, L)
    fused = fuse_params(params, L)

    x_seq = jax.random.normal(k_x, (T, B, A), jnp.float32)
    # init_hidden() returns zeros(hidden_size); broadcast to (B, H) rows.
    hidden0 = jnp.zeros((B, H), jnp.float32)

    # Whole-sequence fused forward.
    out_seq, hidden_T = rnn_sequence_forward(x_seq, hidden0, fused, L)
    jax.block_until_ready((out_seq, hidden_T))

    # Reference + checks.
    ref_out, ref_hid = rnn_reference(x_seq, hidden0, params)
    assert out_seq.shape == (T, B, L) and hidden_T.shape == (B, H)
    assert jnp.allclose(jnp.sum(jnp.exp(out_seq), axis=-1), 1.0, atol=1e-4)
    assert jnp.allclose(out_seq, ref_out, atol=2e-2, rtol=2e-2)
    assert jnp.allclose(hidden_T, ref_hid, atol=2e-2, rtol=2e-2)

    # Single-step API (== module.forward) built on the same kernels.
    out1, hid1 = rnn_forward(x_seq[0], hidden0, fused, L)
    jax.block_until_ready((out1, hid1))
    assert out1.shape == (B, L) and hid1.shape == (B, H)
    assert jnp.allclose(out1, ref_out[0], atol=2e-2, rtol=2e-2)

    print("KERNEL_OK")
</pallas_src>

<mosaic_0001>
module attributes {stable_mosaic.version = 11 : i64} {
  func.func @_input_proj_kernel(%arg0: i32, %arg1: memref<48x16xf32, #tpu.memory_space<vmem>>, %arg2: memref<16x128xf32, #tpu.memory_space<vmem>>, %arg3: memref<1x128xf32, #tpu.memory_space<vmem>>, %arg4: memref<48x128xf32, #tpu.memory_space<vmem>>) attributes {dimension_semantics = [#tpu.dimension_semantics<parallel>], iteration_bounds = array<i64: 1>, scalar_prefetch = 0 : i64, scratch_operands = 0 : i64, tpu.core_type = #tpu.core_type<tc>, window_params = [{transform_indices = @transform_0, window_bounds = array<i64: 48, 16>}, {pipeline_mode = #tpu.pipeline_mode<synchronous>, transform_indices = @transform_1, window_bounds = array<i64: 16, 128>}, {pipeline_mode = #tpu.pipeline_mode<synchronous>, transform_indices = @transform_2, window_bounds = array<i64: 1, 128>}, {transform_indices = @transform_3, window_bounds = array<i64: 48, 128>}]} {
    %c0 = arith.constant 0 : index
    %c0_0 = arith.constant 0 : index
    %0 = vector.load %arg1[%c0, %c0_0] : memref<48x16xf32, #tpu.memory_space<vmem>>, vector<48x16xf32>
    %c0_1 = arith.constant 0 : index
    %c0_2 = arith.constant 0 : index
    %1 = vector.load %arg2[%c0_1, %c0_2] : memref<16x128xf32, #tpu.memory_space<vmem>>, vector<16x128xf32>
    %cst = arith.constant dense<0.000000e+00> : vector<48x128xf32>
    %2 = tpu.matmul %0, %1, %cst {dimension_numbers = #tpu.dot_dimension_numbers<[1], [0], [0], [1], [0, 0, 1, 1], [], []>} : vector<48x16xf32>, vector<16x128xf32>, vector<48x128xf32> -> vector<48x128xf32>
    %c0_3 = arith.constant 0 : index
    %c0_4 = arith.constant 0 : index
    %3 = vector.load %arg3[%c0_3, %c0_4] : memref<1x128xf32, #tpu.memory_space<vmem>>, vector<1x128xf32>
    %4 = vector.broadcast %3 : vector<1x128xf32> to vector<48x128xf32>
    %5 = arith.addf %2, %4 : vector<48x128xf32>
    %c0_5 = arith.constant 0 : index
    %c0_6 = arith.constant 0 : index
    %6 = vector.load %arg4[%c0_5, %c0_6] : memref<48x128xf32, #tpu.memory_space<vmem>>, vector<48x128xf32>
    tpu.vector_store %arg4[%c0_5, %c0_6], %5 {strides = array<i32>} : memref<48x128xf32, #tpu.memory_space<vmem>>, vector<48x128xf32>,
    return
  }
  func.func @transform_0(%arg0: i32) -> (i32, i32) {
    %c0_i32 = arith.constant 0 : i32
    %c0_i32_0 = arith.constant 0 : i32
    return %arg0, %c0_i32 : i32, i32
  }
  func.func @transform_1(%arg0: i32) -> (i32, i32) {
    %c0_i32 = arith.constant 0 : i32
    %c0_i32_0 = arith.constant 0 : i32
    %c0_i32_1 = arith.constant 0 : i32
    return %c0_i32, %c0_i32_0 : i32, i32
  }
  func.func @transform_2(%arg0: i32) -> (i32, i32) {
    %c0_i32 = arith.constant 0 : i32
    %c0_i32_0 = arith.constant 0 : i32
    %c0_i32_1 = arith.constant 0 : i32
    return %c0_i32, %c0_i32_0 : i32, i32
  }
  func.func @transform_3(%arg0: i32) -> (i32, i32) {
    %c0_i32 = arith.constant 0 : i32
    %c0_i32_0 = arith.constant 0 : i32
    return %arg0, %c0_i32 : i32, i32
  }
}

</mosaic_0001>

<bundles_post_ra>
// kernel: tpu_custom_call.1
= control target key start
LH: loop header
LB: loop body
LE: loop exit
PB: predicated region body
PF: predicated region fallthrough
CT: control target
= control target key end

     0   :  { %vm30_vm0 = vcmask 130048   ;;  %s295_s0 = inlined_call_operand.vmem [shape: f32[48,16], index: 0, kind: input, shape index: {}]   ;;  %s296_s1 = inlined_call_operand.vmem [shape: f32[16,128], index: 1, kind: input, shape index: {}]   ;;  %s297_s2 = inlined_call_operand.vmem [shape: f32[1,128], index: 2, kind: input, shape index: {}]   ;;  %s298_s3 = inlined_call_operand.hbm [shape: f32[48,128], index: 3, kind: output, shape index: {}]  }
   0x1   :  { %v21_v0 = vld [vmem:[%s296_s1] sm:$0xff]  ;;  %v22_v1 = vld [vmem:[%s296_s1 + $0x8] sm:$0xff]  ;;  %v17_v2 = vld [vmem:[%s295_s0 + $0x10] sm:$0xff] }
   0x2   :  { %v194_v3 = vpack.c.bf16 %v22_v1, %v21_v0  ;;  %188 = vmatprep.mubr.msk.f32.mxu1 %vm30_vm0, %v17_v2  ;;  %v15_v4 = vld [vmem:[%s295_s0] sm:$0xff] }
   0x3   :  { %185 = vmatprep.mubr.msk.f32.mxu0 %vm30_vm0, %v15_v4 }
   0x4   :  { %198 = vmatprep.subr.bf16.mxu1 %v194_v3  ;;  %195 = vmatprep.subr.bf16.mxu0 %v194_v3 }
   0x5   :  { %8 = vsyncpa [#allocation3], 0  ;;  %199 = vmatpush3.bf16.msra.mxu1 %v194_v3  ;;  %197 = vmatpush3.bf16.msra.mxu0 %v194_v3  ;;  %v18_v5 = vld [vmem:[%s295_s0 + $0x18] sm:$0xff]  ;;  %v16_v6 = vld [vmem:[%s295_s0 + $0x8] sm:$0xff]  ;;  %s227_s29 = smov [#allocation2]  }
   0x6   :  { %v19_v7 = vld [vmem:[%s295_s0 + $0x20] sm:$0xff]  ;;  %v20_v8 = vld [vmem:[%s295_s0 + $0x28] sm:$0xff]  ;;  %s155_s30 = sshll.u32 %s227_s29, 4  ;;  %s156_s30 = int_to_ptr.vmem [resolvable:$true] %s155_s30 }
   0x7   :  { %v166_v9 = vld [vmem:[%s297_s2] ss:$0 sm:$0xff]  ;;  %s203_s0 = scalar_lea.vmem %s156_s30, 768  ;;  %p208_p1 = scmp.lt.s32.totalorder %s156_s30, %s156_s30 }
   0x8   :  { %189 = vmatmul.mubr.msk.f32.vlgmr.msra.gmra.mrb[0].mxu1 %vm30_vm0, %v18_v5  ;;  %186 = vmatmul.mubr.msk.f32.vlgmr.msra.gmra.mrb[0].mxu0 %vm30_vm0, %v16_v6  ;;  %p204_p0 = scmp.ne.s32.totalorder %s156_s30, %s203_s0  ;;  %p209_p2 = scmp.lt.s32.totalorder %s203_s0, %s203_s0 }
   0x9   :  { %191 = vmatprep.mubr.msk.f32.mxu1 %vm30_vm0, %v19_v7 }
   0xa   :  { %p210_p3 = por %p209_p2, %p208_p1 }
   0xc   :  { %192 = vmatmul.mubr.msk.f32.gmra.mrb[2].mxu1 %vm30_vm0, %v20_v8  ;;  %p211_p4 = pnand %p210_p3, %p204_p0 }
  0xdb   :  { %v190_v10 = vpop.f32.mrb[0].mxu1  ;;  %v187_v11 = vpop.f32.mrb[0].mxu0 }
  0xdc   :  { %v131_v12 = vadd.f32 %v190_v10, %v166_v9  ;;  %v125_v13 = vpop.f32.mrb[1].mxu1  ;;  %v121_v14 = vadd.f32 %v187_v11, %v166_v9  ;;  %v115_v15 = vpop.f32.mrb[1].mxu0 }
  0xdd   :  { %v126_v16 = vadd.f32 %v166_v9, %v125_v13  ;;  %v116_v17 = vadd.f32 %v166_v9, %v115_v15 }
  0xde   :  { %147 = vst [vmem:[#allocation2 + $0x18] sm:$0xff] %v131_v12  ;;  %145 = vst [vmem:[#allocation2 + $0x8] sm:$0xff] %v121_v14 }
  0xdf   :  { %146 = vst [vmem:[#allocation2 + $0x10] sm:$0xff] %v126_v16  ;;  %144 = vst [vmem:[#allocation2] sm:$0xff] %v116_v17  ;;  %v193_v18 = vpop.f32.mrb[2].mxu1 }
  0xe0   :  { %v141_v19 = vadd.f32 %v193_v18, %v166_v9  ;;  %v135_v20 = vpop.f32.mrb[3].mxu1 }
  0xe1   :  { %v136_v21 = vadd.f32 %v166_v9, %v135_v20 }
  0xe2   :  { %149 = vst [vmem:[#allocation2 + $0x28] sm:$0xff] %v141_v19 }
  0xe3   :  { %148 = vst [vmem:[#allocation2 + $0x20] sm:$0xff] %v136_v21 }
  0xe4   :  { %214 = shalt.err (!%p211_p4)
}
  0xe5   :  { %s215_s5 = scalar_lea.hbm %s298_s3, 768 }
  0xe6   :  { %p216_p5 = scmp.ne.s32.totalorder %s298_s3, %s215_s5  ;;  %p219_p6 = scmp.lt.u32.totalorder %s215_s5, %s298_s3 }
  0xe8   :  { %p221_p7 = pnand %p219_p6, %p216_p5 }
  0xea   :  { %224 = shalt.err (!%p221_p7)
}
  0xeb   :  { %s228_s10 = smov 128   ;;  %s229_s11 = smov 8  }
  0xec   :  { %161 = dma.vmem_to_hbm [thread:$0]  %s156_s30, 768, %s298_s3, [#allocation3], %s228_s10, %s228_s10, %s229_s11  }
  0xed   :  { %225 = dma.done.wait [#allocation3], 768  }
  0xee   :  { %226 = vsyncadd [#allocation3], 4294966528 }
  0xef   :  { %165 = vsyncpa [#allocation3], 1 }

</bundles_post_ra>
